<compile_context>
chip_gen: v5e
topology: v5e:2x2
jax: 0.10.0
libtpu: 0.0.40
codegen_flags: <defaults>
</compile_context>

<pallas_src>
import math
import functools

import jax
import jax.numpy as jnp
from jax import lax
from jax.experimental import pallas as pl
from jax.experimental.pallas import tpu as pltpu


def _same_pads(h, w, kh, kw, sh, sw):
    ho = math.ceil(h / sh)
    wo = math.ceil(w / sw)
    extra_h = (wo - 1) * sw - w + kw   # total horizontal padding
    extra_v = (ho - 1) * sh - h + kh   # total vertical padding
    left = extra_h // 2
    right = extra_h - left
    top = extra_v // 2
    bottom = extra_v - top
    return ho, wo, top, bottom, left, right


def _ds(start, size, stride):
    return pl.ds(start, size, stride) if stride != 1 else pl.ds(start, size)


def _maxpool_kernel(x_ref, o_ref, rm_ref, *, kh, kw, sh, sw, ho, wo, h, w,
                    top, left, n_top, n_bot, n_left, n_right):
    """Fused SAME-pad max-pool for one (n_tile, h, w, c_tile) NHWC block.

    Layout: channels on the 128-lane axis, W on sublanes, H/N major dims,
    so every strided window tap stays off the lane dimension.

      x_ref  : (nt, h,  w,  ct)  unpadded input block
      o_ref  : (nt, ho, wo, ct)  pooled output block
      rm_ref : (nt, ho, w,  ct)  scratch: H-reduced intermediate (written once)

    Padding is never materialized: interior output rows/cols (all taps in
    range) accumulate in vregs and are stored once; the few border rows/cols
    use their statically-known valid tap subset and fold in the pad value 0
    with a final max(..., 0).
    """
    # --- phase 1: H reduction (kh taps, stride sh on a major dim) -----------
    ho_mid = ho - n_top - n_bot
    if ho_mid > 0:
        acc = x_ref[:, _ds(n_top * sh - top, ho_mid, sh), :, :]
        for ki in range(1, kh):
            acc = jnp.maximum(
                acc, x_ref[:, _ds(n_top * sh + ki - top, ho_mid, sh), :, :])
        rm_ref[:, pl.ds(n_top, ho_mid), :, :] = acc

    border_rows = sorted(set(list(range(min(n_top, ho))) +
                             list(range(max(ho - n_bot, 0), ho))))
    for oh in border_rows:                       # tiny static count (< kh rows)
        rows = [oh * sh + ki - top for ki in range(kh)]
        valid = [r for r in rows if 0 <= r < h]
        val = x_ref[:, pl.ds(valid[0], 1), :, :]
        for r in valid[1:]:
            val = jnp.maximum(val, x_ref[:, pl.ds(r, 1), :, :])
        val = jnp.maximum(val, 0)                # window overlaps zero padding
        rm_ref[:, pl.ds(oh, 1), :, :] = val

    # --- phase 2: W reduction (kw taps, stride sw on the sublane axis) ------
    wo_mid = wo - n_left - n_right
    if wo_mid > 0:
        acc = rm_ref[:, :, _ds(n_left * sw - left, wo_mid, sw), :]
        for kj in range(1, kw):
            acc = jnp.maximum(
                acc, rm_ref[:, :, _ds(n_left * sw + kj - left, wo_mid, sw), :])
        o_ref[:, :, pl.ds(n_left, wo_mid), :] = acc

    border_cols = sorted(set(list(range(min(n_left, wo))) +
                             list(range(max(wo - n_right, 0), wo))))
    for ow in border_cols:                       # tiny static count (< kw cols)
        cols = [ow * sw + kj - left for kj in range(kw)]
        valid = [c0 for c0 in cols if 0 <= c0 < w]
        val = rm_ref[:, :, pl.ds(valid[0], 1), :]
        for c0 in valid[1:]:
            val = jnp.maximum(val, rm_ref[:, :, pl.ds(c0, 1), :])
        val = jnp.maximum(val, 0)                # window overlaps zero padding
        o_ref[:, :, pl.ds(ow, 1), :] = val


def _vmem_capacity_bytes():
    try:
        return int(pltpu.get_tpu_info().vmem_capacity_bytes)
    except Exception:
        return 64 * 1024 * 1024   # assume the smallest (v7x) if the query fails


def maxpool2d_static_same_padding_nhwc(x_nhwc, kernel_size, stride):
    """Fused SAME zero-pad + max-pool.  Input/output NHWC (preferred entry)."""
    if isinstance(kernel_size, int):
        kernel_size = (kernel_size, kernel_size)
    if isinstance(stride, int):
        stride = (stride, stride)
    kh, kw = int(kernel_size[0]), int(kernel_size[1])
    sh, sw = int(stride[0]), int(stride[1])

    n, h, w, c = x_nhwc.shape
    ho, wo, top, bottom, left, right = _same_pads(h, w, kh, kw, sh, sw)

    # Negative "SAME" padding == crop (only when kernel < stride); never hit by
    # EfficientDet's (3, 2) config, so wrapper-side slicing is fine.
    if top < 0 or bottom < 0:
        x_nhwc = lax.slice_in_dim(x_nhwc, max(-top, 0), h + min(bottom, 0), axis=1)
        top, bottom = max(top, 0), max(bottom, 0)
        h = x_nhwc.shape[1]
    if left < 0 or right < 0:
        x_nhwc = lax.slice_in_dim(x_nhwc, max(-left, 0), w + min(right, 0), axis=2)
        left, right = max(left, 0), max(right, 0)
        w = x_nhwc.shape[2]

    # Static counts of border output rows/cols whose windows overlap the pad.
    n_top = sum(1 for oh in range(ho) if oh * sh - top < 0)
    n_bot = sum(1 for oh in range(ho) if oh * sh - top + kh - 1 > h - 1)
    n_left = sum(1 for ow in range(wo) if ow * sw - left < 0)
    n_right = sum(1 for ow in range(wo) if ow * sw - left + kw - 1 > w - 1)

    # Channel tile: full-C blocks (contiguous rows -> efficient DMA) up to 512
    # lanes, else 128-lane tiles for wide multiples of 128.
    if c <= 512 or c % 128 != 0:
        # TODO(synk): masked cdiv channel grid for huge C that isn't a
        # multiple of 128 (doesn't occur in EfficientDet's BiFPN widths).
        c_tile = c
    else:
        c_tile = 128
    c_blocks = c // c_tile

    itemsize = jnp.dtype(x_nhwc.dtype).itemsize

    def footprint(nt):
        # Everything resident per grid step: double-buffered in/out + scratch.
        in_b = nt * h * w * c_tile * itemsize
        out_b = nt * ho * wo * c_tile * itemsize
        rm_b = nt * ho * w * c_tile * itemsize
        return 2 * in_b + 2 * out_b + rm_b

    cap = _vmem_capacity_bytes()
    if cap >= 96 * 1024 * 1024:          # v5e / v6e: 128 MiB VMEM per core
        block_budget = 48 * 1024 * 1024
        base_limit = 64 * 1024 * 1024
    else:                                 # v7x: 64 MiB VMEM per TensorCore
        block_budget = 24 * 1024 * 1024
        base_limit = 40 * 1024 * 1024

    # Pack small images per step (per-step overhead ~0.35us), but keep enough
    # grid steps for pipeline overlap / megacore sharding.
    min_steps = min(4, n * c_blocks)
    n_tile = 1
    for nt in range(n, 0, -1):
        if n % nt:
            continue
        if footprint(nt) > block_budget:
            continue
        if (n // nt) * c_blocks < min_steps:
            continue
        n_tile = nt
        break

    vmem_limit = max(base_limit, footprint(n_tile) + 8 * 1024 * 1024)
    vmem_limit = int(min(vmem_limit, 128 * 1024 * 1024))

    kernel = functools.partial(
        _maxpool_kernel, kh=kh, kw=kw, sh=sh, sw=sw, ho=ho, wo=wo, h=h, w=w,
        top=top, left=left, n_top=n_top, n_bot=n_bot,
        n_left=n_left, n_right=n_right)

    grid = (n // n_tile, c_blocks)
    return pl.pallas_call(
        kernel,
        out_shape=jax.ShapeDtypeStruct((n, ho, wo, c), x_nhwc.dtype),
        grid_spec=pltpu.PrefetchScalarGridSpec(
            num_scalar_prefetch=0,
            grid=grid,
            in_specs=[pl.BlockSpec((n_tile, h, w, c_tile),
                                   lambda i, j: (i, 0, 0, j))],
            out_specs=pl.BlockSpec((n_tile, ho, wo, c_tile),
                                   lambda i, j: (i, 0, 0, j)),
            scratch_shapes=[
                pltpu.VMEM((n_tile, ho, w, c_tile), x_nhwc.dtype),
            ]),
        compiler_params=pltpu.CompilerParams(
            dimension_semantics=("parallel", "parallel"),
            vmem_limit_bytes=vmem_limit),
    )(x_nhwc)


def maxpool2d_static_same_padding(x_nchw, kernel_size, stride):
    """Forward of MaxPool2dStaticSamePadding with the PyTorch NCHW interface.

    The two transposes are the only extra HBM passes; carry NHWC through the
    surrounding model (call maxpool2d_static_same_padding_nhwc) to drop them.
    """
    x = jnp.transpose(x_nchw, (0, 2, 3, 1))            # NCHW -> NHWC
    out = maxpool2d_static_same_padding_nhwc(x, kernel_size, stride)
    return jnp.transpose(out, (0, 3, 1, 2))            # NHWC -> NCHW


# ----------------------------- reference ------------------------------------
def _pad_axis(arr, axis, lo, hi):
    """F.pad semantics: negative pad == crop, positive pad == zero pad."""
    if lo < 0:
        arr = lax.slice_in_dim(arr, -lo, arr.shape[axis], axis=axis)
        lo = 0
    if hi < 0:
        arr = lax.slice_in_dim(arr, 0, arr.shape[axis] + hi, axis=axis)
        hi = 0
    pads = [(0, 0)] * arr.ndim
    pads[axis] = (lo, hi)
    return jnp.pad(arr, pads)


def _reference_maxpool(x_nchw, kernel_size, stride):
    """Pure-JAX reference of the PyTorch module (pad with 0, then max pool)."""
    kh, kw = kernel_size
    sh, sw = stride
    n, c, h, w = x_nchw.shape
    _, _, top, bottom, left, right = _same_pads(h, w, kh, kw, sh, sw)
    xp = _pad_axis(_pad_axis(x_nchw, 2, top, bottom), 3, left, right)
    return lax.reduce_window(
        xp, -jnp.inf, lax.max,
        window_dimensions=(1, 1, kh, kw),
        window_strides=(1, 1, sh, sw),
        padding="VALID").astype(x_nchw.dtype)


if __name__ == "__main__":
    # Module config used throughout EfficientDet: MaxPool2dStaticSamePadding(3, 2)
    key = jax.random.PRNGKey(0)
    k1, k2 = jax.random.split(key)

    # Even spatial dims (pads: top=left=0, bottom=right=1), NCHW input.
    x = jax.random.normal(k1, (2, 4, 16, 16), dtype=jnp.float32)
    out = jax.block_until_ready(maxpool2d_static_same_padding(x, 3, 2))
    ref = jax.block_until_ready(_reference_maxpool(x, (3, 3), (2, 2)))
    assert out.shape == ref.shape == (2, 4, 8, 8), (out.shape, ref.shape)
    assert jnp.allclose(out, ref), "Pallas maxpool mismatch vs reference (even dims)"

    # Odd spatial dims exercise the top/left padded path (top = left = 1).
    x2 = jax.random.normal(k2, (2, 4, 15, 17), dtype=jnp.float32)
    out2 = jax.block_until_ready(maxpool2d_static_same_padding(x2, 3, 2))
    ref2 = jax.block_until_ready(_reference_maxpool(x2, (3, 3), (2, 2)))
    assert out2.shape == ref2.shape, (out2.shape, ref2.shape)
    assert jnp.allclose(out2, ref2), "Pallas maxpool mismatch vs reference (odd dims)"

    print("KERNEL_OK")
</pallas_src>

<mosaic_0001>
module attributes {stable_mosaic.version = 11 : i64} {
  func.func @_maxpool_kernel(%arg0: i32, %arg1: i32, %arg2: memref<1x16x16x4xf32, #tpu.memory_space<vmem>>, %arg3: memref<1x8x8x4xf32, #tpu.memory_space<vmem>>, %arg4: memref<1x8x16x4xf32, #tpu.memory_space<vmem>>) attributes {dimension_semantics = [#tpu.dimension_semantics<parallel>, #tpu.dimension_semantics<parallel>], iteration_bounds = array<i64: 2, 1>, scalar_prefetch = 0 : i64, scratch_operands = 1 : i64, tpu.core_type = #tpu.core_type<tc>, window_params = [{transform_indices = @transform_0, window_bounds = array<i64: 1, 16, 16, 4>}, {transform_indices = @transform_1, window_bounds = array<i64: 1, 8, 8, 4>}]} {
    %c0 = arith.constant 0 : index
    %c0_0 = arith.constant 0 : index
    %c0_1 = arith.constant 0 : index
    %c0_2 = arith.constant 0 : index
    %0 = tpu.strided_load %arg2[%c0, %c0_0, %c0_1, %c0_2] {strides = array<i32: 1, 2, 1, 1>} : memref<1x16x16x4xf32, #tpu.memory_space<vmem>>, vector<1x7x16x4xf32>
    %c0_3 = arith.constant 0 : index
    %c1 = arith.constant 1 : index
    %c0_4 = arith.constant 0 : index
    %c0_5 = arith.constant 0 : index
    %1 = tpu.strided_load %arg2[%c0_3, %c1, %c0_4, %c0_5] {strides = array<i32: 1, 2, 1, 1>} : memref<1x16x16x4xf32, #tpu.memory_space<vmem>>, vector<1x7x16x4xf32>
    %2 = arith.maximumf %0, %1 : vector<1x7x16x4xf32>
    %c0_6 = arith.constant 0 : index
    %c2 = arith.constant 2 : index
    %c0_7 = arith.constant 0 : index
    %c0_8 = arith.constant 0 : index
    %3 = tpu.strided_load %arg2[%c0_6, %c2, %c0_7, %c0_8] {strides = array<i32: 1, 2, 1, 1>} : memref<1x16x16x4xf32, #tpu.memory_space<vmem>>, vector<1x7x16x4xf32>
    %4 = arith.maximumf %2, %3 : vector<1x7x16x4xf32>
    %c0_9 = arith.constant 0 : index
    %c0_10 = arith.constant 0 : index
    %c0_11 = arith.constant 0 : index
    %c0_12 = arith.constant 0 : index
    %5 = vector.load %arg4[%c0_9, %c0_10, %c0_11, %c0_12] : memref<1x8x16x4xf32, #tpu.memory_space<vmem>>, vector<1x7x16x4xf32>
    tpu.vector_store %arg4[%c0_9, %c0_10, %c0_11, %c0_12], %4 {strides = array<i32>} : memref<1x8x16x4xf32, #tpu.memory_space<vmem>>, vector<1x7x16x4xf32>,
    %c0_13 = arith.constant 0 : index
    %c14 = arith.constant 14 : index
    %c0_14 = arith.constant 0 : index
    %c0_15 = arith.constant 0 : index
    %6 = vector.load %arg2[%c0_13, %c14, %c0_14, %c0_15] : memref<1x16x16x4xf32, #tpu.memory_space<vmem>>, vector<1x1x16x4xf32>
    %c0_16 = arith.constant 0 : index
    %c15 = arith.constant 15 : index
    %c0_17 = arith.constant 0 : index
    %c0_18 = arith.constant 0 : index
    %7 = vector.load %arg2[%c0_16, %c15, %c0_17, %c0_18] : memref<1x16x16x4xf32, #tpu.memory_space<vmem>>, vector<1x1x16x4xf32>
    %8 = arith.maximumf %6, %7 : vector<1x1x16x4xf32>
    %cst = arith.constant 0.000000e+00 : f32
    %9 = vector.broadcast %cst : f32 to vector<1x1x16x4xf32>
    %10 = arith.maximumf %8, %9 : vector<1x1x16x4xf32>
    %c0_19 = arith.constant 0 : index
    %c7 = arith.constant 7 : index
    %c0_20 = arith.constant 0 : index
    %c0_21 = arith.constant 0 : index
    %11 = vector.load %arg4[%c0_19, %c7, %c0_20, %c0_21] : memref<1x8x16x4xf32, #tpu.memory_space<vmem>>, vector<1x1x16x4xf32>
    tpu.vector_store %arg4[%c0_19, %c7, %c0_20, %c0_21], %10 {strides = array<i32>} : memref<1x8x16x4xf32, #tpu.memory_space<vmem>>, vector<1x1x16x4xf32>,
    %c0_22 = arith.constant 0 : index
    %c0_23 = arith.constant 0 : index
    %c0_24 = arith.constant 0 : index
    %c0_25 = arith.constant 0 : index
    %12 = tpu.strided_load %arg4[%c0_22, %c0_23, %c0_24, %c0_25] {strides = array<i32: 1, 1, 2, 1>} : memref<1x8x16x4xf32, #tpu.memory_space<vmem>>, vector<1x8x7x4xf32>
    %c0_26 = arith.constant 0 : index
    %c0_27 = arith.constant 0 : index
    %c1_28 = arith.constant 1 : index
    %c0_29 = arith.constant 0 : index
    %13 = tpu.strided_load %arg4[%c0_26, %c0_27, %c1_28, %c0_29] {strides = array<i32: 1, 1, 2, 1>} : memref<1x8x16x4xf32, #tpu.memory_space<vmem>>, vector<1x8x7x4xf32>
    %14 = arith.maximumf %12, %13 : vector<1x8x7x4xf32>
    %c0_30 = arith.constant 0 : index
    %c0_31 = arith.constant 0 : index
    %c2_32 = arith.constant 2 : index
    %c0_33 = arith.constant 0 : index
    %15 = tpu.strided_load %arg4[%c0_30, %c0_31, %c2_32, %c0_33] {strides = array<i32: 1, 1, 2, 1>} : memref<1x8x16x4xf32, #tpu.memory_space<vmem>>, vector<1x8x7x4xf32>
    %16 = arith.maximumf %14, %15 : vector<1x8x7x4xf32>
    %c0_34 = arith.constant 0 : index
    %c0_35 = arith.constant 0 : index
    %c0_36 = arith.constant 0 : index
    %c0_37 = arith.constant 0 : index
    %17 = vector.load %arg3[%c0_34, %c0_35, %c0_36, %c0_37] : memref<1x8x8x4xf32, #tpu.memory_space<vmem>>, vector<1x8x7x4xf32>
    tpu.vector_store %arg3[%c0_34, %c0_35, %c0_36, %c0_37], %16 {strides = array<i32>} : memref<1x8x8x4xf32, #tpu.memory_space<vmem>>, vector<1x8x7x4xf32>,
    %c0_38 = arith.constant 0 : index
    %c0_39 = arith.constant 0 : index
    %c14_40 = arith.constant 14 : index
    %c0_41 = arith.constant 0 : index
    %18 = vector.load %arg4[%c0_38, %c0_39, %c14_40, %c0_41] : memref<1x8x16x4xf32, #tpu.memory_space<vmem>>, vector<1x8x1x4xf32>
    %c0_42 = arith.constant 0 : index
    %c0_43 = arith.constant 0 : index
    %c15_44 = arith.constant 15 : index
    %c0_45 = arith.constant 0 : index
    %19 = vector.load %arg4[%c0_42, %c0_43, %c15_44, %c0_45] : memref<1x8x16x4xf32, #tpu.memory_space<vmem>>, vector<1x8x1x4xf32>
    %20 = arith.maximumf %18, %19 : vector<1x8x1x4xf32>
    %cst_46 = arith.constant 0.000000e+00 : f32
    %21 = vector.broadcast %cst_46 : f32 to vector<1x8x1x4xf32>
    %22 = arith.maximumf %20, %21 : vector<1x8x1x4xf32>
    %c0_47 = arith.constant 0 : index
    %c0_48 = arith.constant 0 : index
    %c7_49 = arith.constant 7 : index
    %c0_50 = arith.constant 0 : index
    %23 = vector.load %arg3[%c0_47, %c0_48, %c7_49, %c0_50] : memref<1x8x8x4xf32, #tpu.memory_space<vmem>>, vector<1x8x1x4xf32>
    tpu.vector_store %arg3[%c0_47, %c0_48, %c7_49, %c0_50], %22 {strides = array<i32>} : memref<1x8x8x4xf32, #tpu.memory_space<vmem>>, vector<1x8x1x4xf32>,
    return
  }
  func.func @transform_0(%arg0: i32, %arg1: i32) -> (i32, i32, i32, i32) {
    %c0_i32 = arith.constant 0 : i32
    %c0_i32_0 = arith.constant 0 : i32
    %c0_i32_1 = arith.constant 0 : i32
    return %arg0, %c0_i32, %c0_i32_0, %arg1 : i32, i32, i32, i32
  }
  func.func @transform_1(%arg0: i32, %arg1: i32) -> (i32, i32, i32, i32) {
    %c0_i32 = arith.constant 0 : i32
    %c0_i32_0 = arith.constant 0 : i32
    %c0_i32_1 = arith.constant 0 : i32
    return %arg0, %c0_i32, %c0_i32_0, %arg1 : i32, i32, i32, i32
  }
}

</mosaic_0001>

<bundles_post_ra>
// kernel: tpu_custom_call.1
= control target key start
LH: loop header
LB: loop body
LE: loop exit
PB: predicated region body
PF: predicated region fallthrough
CT: control target
= control target key end

     0   :  { %s547_s6 = smov 0   ;;  %s549_s7 = smov 0   ;;  %s668_s0 = inlined_call_operand.vmem [shape: f32[2,16,16,4], index: 0, kind: input, shape index: {}]   ;;  %s669_s1 = inlined_call_operand.vmem [shape: f32[2,8,8,4], index: 1, kind: output, shape index: {}]  }
   0x1   :  { %s551_s8 = smov 0  }
   0x2 LB: > { %s23_s9 = sadd.s32 1, %s531_s7  ;;  %p448_p0 = scmp.ge.s32.totalorder %s535_s8, 1  ;;  %s535_s8 = sphi %s551_s8, %s11_s8   ;;  %s531_s7 = sphi %s549_s7, %s671_s7   ;;  %s527_s6 = sphi %s547_s6, %s670_s6  }
   0x3   : > { %p25_p1 = scmp.ge.s32.totalorder %s23_s9, 2  ;;  %p106_p2 = scmp.lt.s32.totalorder %s535_s8, 3 }
   0x5   : > { %s673_s9 = smov (%p25_p1, %s23_s9), 0  ;;  %p107_p3 = pnand %p448_p0, %p106_p2 }
   0x6   : > { %p132_p4 = scmp.lt.s32.totalorder (!%p107_p3), %s527_s6, 1 }
   0x7   : > { %110 = sbr.rel (%p107_p3) target bundleno = 59 (0x3b), region = 24 }
   0xc   : > { %s675_s6 = smov (!%p132_p4, %s527_s6), 1  ;;  %vm220_vm0 = vcmask 31744   ;;  %vm311_vm1 = vcmask 30720   ;;  %vm352_vm2 = vcmask 24576  }
   0xd   : > { %s487_s10 = sshll.u32 %s675_s6, 8  ;;  %s488_s14 = sshll.u32 %s675_s6, 6 }
   0xe   : > { %s571_s13 = scalar_lea.vmem %s668_s0, %s487_s10  ;;  %s623_s17 = scalar_lea.vmem %s669_s1, %s488_s14 }
   0xf   : > { %v148_v0 = vld [vmem:[%s571_s13] sm:$0xff]  ;;  %v453_v1 = vld [vmem:[%s571_s13 + $0x10] sm:$0xff]  ;;  %v149_v4 = vld [vmem:[%s571_s13 + $0x8] sm:$0xff] }
  0x10   : > { %v467_v2 = vld [vmem:[%s571_s13 + $0x20] sm:$0xff]  ;;  %v177_v3 = vmax.f32 %v148_v0, %v453_v1  ;;  %v454_v5 = vld [vmem:[%s571_s13 + $0x18] sm:$0xff]  ;;  %v468_v6 = vld [vmem:[%s571_s13 + $0x28] sm:$0xff] }
  0x11   : > { %v178_v7 = vmax.f32 %v149_v4, %v454_v5  ;;  %v455_v8 = vld [vmem:[%s571_s13 + $0x30] sm:$0xff]  ;;  %v469_v9 = vld [vmem:[%s571_s13 + $0x40] sm:$0xff]  ;;  %v456_v10 = vld [vmem:[%s571_s13 + $0x38] sm:$0xff] }
  0x12   : > { %v206_v11 = vmax.f32 %v177_v3, %v467_v2  ;;  %v179_v12 = vmax.f32 %v467_v2, %v455_v8  ;;  %v180_v13 = vmax.f32 %v468_v6, %v456_v10  ;;  %v470_v14 = vld [vmem:[%s571_s13 + $0x48] sm:$0xff]  ;;  %v457_v15 = vld [vmem:[%s571_s13 + $0x50] sm:$0xff]  ;;  %v471_v16 = vld [vmem:[%s571_s13 + $0x60] sm:$0xff] }
  0x13   : > { %v207_v17 = vmax.f32 %v178_v7, %v468_v6  ;;  %v181_v18 = vmax.f32 %v469_v9, %v457_v15  ;;  %v458_v19 = vld [vmem:[%s571_s13 + $0x58] sm:$0xff]  ;;  %v472_v20 = vld [vmem:[%s571_s13 + $0x68] sm:$0xff]  ;;  %v459_v21 = vld [vmem:[%s571_s13 + $0x70] sm:$0xff] }
  0x14   : > { %221 = vst.msk [vmem:[#allocation2] sm:$0xff] %vm220_vm0, %v206_v11  ;;  %v208_v22 = vmax.f32 %v179_v12, %v469_v9  ;;  %v209_v23 = vmax.f32 %v180_v13, %v470_v14  ;;  %v182_v24 = vmax.f32 %v470_v14, %v458_v19  ;;  %v183_v25 = vmax.f32 %v471_v16, %v459_v21  ;;  %v473_v26 = vld [vmem:[%s571_s13 + $0x80] sm:$0xff]  ;;  %v460_v27 = vld [vmem:[%s571_s13 + $0x78] sm:$0xff]  ;;  %v474_v28 = vld [vmem:[%s571_s13 + $0x88] sm:$0xff] }
  0x15   : > { %222 = vst.msk [vmem:[#allocation2 + $0x8] sm:$0xff] %vm220_vm0, %v207_v17  ;;  %v210_v29 = vmax.f32 %v181_v18, %v471_v16  ;;  %v184_v30 = vmax.f32 %v472_v20, %v460_v27  ;;  %v461_v31 = vld [vmem:[%s571_s13 + $0x90] sm:$0xff]  ;;  %v475_v32 = vld [vmem:[%s571_s13 + $0xa0] sm:$0xff]  ;;  %v462_v33 = vld [vmem:[%s571_s13 + $0x98] sm:$0xff] }
  0x16   : > { %223 = vst.msk [vmem:[#allocation2 + $0x10] sm:$0xff] %vm220_vm0, %v208_v22  ;;  %v211_v34 = vmax.f32 %v182_v24, %v472_v20  ;;  %v212_v35 = vmax.f32 %v183_v25, %v473_v26  ;;  %v185_v36 = vmax.f32 %v473_v26, %v461_v31  ;;  %v186_v37 = vmax.f32 %v474_v28, %v462_v33  ;;  %v476_v38 = vld [vmem:[%s571_s13 + $0xa8] sm:$0xff]  ;;  %v463_v39 = vld [vmem:[%s571_s13 + $0xb0] sm:$0xff]  ;;  %v477_v40 = vld [vmem:[%s571_s13 + $0xc0] sm:$0xff] }
  0x17   : > { %224 = vst.msk [vmem:[#allocation2 + $0x18] sm:$0xff] %vm220_vm0, %v209_v23  ;;  %v213_v41 = vmax.f32 %v184_v30, %v474_v28  ;;  %v187_v42 = vmax.f32 %v475_v32, %v463_v39  ;;  %v464_v43 = vld [vmem:[%s571_s13 + $0xb8] sm:$0xff]  ;;  %v478_v44 = vld [vmem:[%s571_s13 + $0xc8] sm:$0xff]  ;;  %v465_v45 = vld [vmem:[%s571_s13 + $0xd0] sm:$0xff] }
  0x18   : > { %225 = vst.msk [vmem:[#allocation2 + $0x20] sm:$0xff] %vm220_vm0, %v210_v29  ;;  %v214_v46 = vmax.f32 %v185_v36, %v475_v32  ;;  %v188_v47 = vmax.f32 %v476_v38, %v464_v43  ;;  %v189_v48 = vmax.f32 %v477_v40, %v465_v45  ;;  %v479_v49 = vld [vmem:[%s571_s13 + $0xe0] sm:$0xff]  ;;  %v466_v50 = vld [vmem:[%s571_s13 + $0xd8] sm:$0xff]  ;;  %v480_v51 = vld [vmem:[%s571_s13 + $0xe8] sm:$0xff]  ;;  %v215_v52 = vmax.f32 %v186_v37, %v476_v38 }
  0x19   : > { %226 = vst.msk [vmem:[#allocation2 + $0x28] sm:$0xff] %vm220_vm0, %v211_v34  ;;  %v190_v53 = vmax.f32 %v478_v44, %v466_v50  ;;  %v483_v54 = vld [vmem:[%s571_s13 + $0xf0] sm:$0xff]  ;;  %v484_v55 = vld [vmem:[%s571_s13 + $0xf8] sm:$0xff]  ;;  %v216_v56 = vmax.f32 %v187_v42, %v477_v40 }
  0x1a   : > { %227 = vst.msk [vmem:[#allocation2 + $0x30] sm:$0xff] %vm220_vm0, %v212_v35  ;;  %v241_v57 = vmax.f32 %v479_v49, %v483_v54  ;;  %v217_v58 = vmax.f32 %v188_v47, %v478_v44  ;;  %v242_v59 = vmax.f32 %v480_v51, %v484_v55  ;;  %v218_v60 = vmax.f32 %v189_v48, %v479_v49 }
  0x1b   : > { %228 = vst.msk [vmem:[#allocation2 + $0x38] sm:$0xff] %vm220_vm0, %v213_v41  ;;  %v219_v62 = vmax.f32 %v190_v53, %v480_v51 }
  0x1c   : > { %229 = vst.msk [vmem:[#allocation2 + $0x40] sm:$0xff] %vm220_vm0, %v214_v46  ;;  %v248_v61 = vld [vmem:[#allocation2] ss:$2 sm:$0x7f]  ;;  %v243_v0 = vmax.f32 %v241_v57, 0.0  ;;  %v244_v3 = vmax.f32 %v242_v59, 0.0 }
  0x1d   : > { %230 = vst.msk [vmem:[#allocation2 + $0x48] sm:$0xff] %vm220_vm0, %v215_v52  ;;  %v264_v63 = vld [vmem:[#allocation2 + $0x1] ss:$2 sm:$0x7f]  ;;  %v320_v10 = vld [vmem:[#allocation2 + $0xe] sm:$0x1] }
  0x1e   : > { %231 = vst.msk [vmem:[#allocation2 + $0x50] sm:$0xff] %vm220_vm0, %v216_v56  ;;  %v279_v1 = vmax.f32 %v248_v61, %v264_v63  ;;  %v288_v2 = vld [vmem:[#allocation2 + $0x2] ss:$2 sm:$0x7f]  ;;  %v328_v11 = vld [vmem:[#allocation2 + $0xf] sm:$0x1] }
  0x1f   : > { %232 = vst.msk [vmem:[#allocation2 + $0x58] sm:$0xff] %vm220_vm0, %v217_v58  ;;  %v250_v4 = vld [vmem:[#allocation2 + $0x10] ss:$2 sm:$0x7f]  ;;  %v321_v14 = vld [vmem:[#allocation2 + $0x1e] sm:$0x1]  ;;  %v336_v25 = vmax.f32 %v320_v10, %v328_v11 }
  0x20   : > { %233 = vst.msk [vmem:[#allocation2 + $0x60] sm:$0xff] %vm220_vm0, %v218_v60  ;;  %v303_v5 = vmax.f32 %v279_v1, %v288_v2  ;;  %v266_v6 = vld [vmem:[#allocation2 + $0x11] ss:$2 sm:$0x7f]  ;;  %v329_v15 = vld [vmem:[#allocation2 + $0x1f] sm:$0x1] }
  0x21   : > { %234 = vst.msk [vmem:[#allocation2 + $0x68] sm:$0xff] %vm220_vm0, %v219_v62  ;;  %v280_v7 = vmax.f32 %v250_v4, %v266_v6  ;;  %v290_v8 = vld [vmem:[#allocation2 + $0x12] ss:$2 sm:$0x7f]  ;;  %v337_v28 = vmax.f32 %v321_v14, %v329_v15  ;;  %v344_v37 = vmax.f32 %v336_v25, 0.0 }
  0x22   : > { %246 = vst.msk [vmem:[#allocation2 + $0x70] sm:$0xff] %vm220_vm0, %v243_v0  ;;  %v252_v9 = vld [vmem:[#allocation2 + $0x20] ss:$2 sm:$0x7f]  ;;  %v322_v38 = vld [vmem:[#allocation2 + $0x2e] sm:$0x1] }
  0x23   : > { %247 = vst.msk [vmem:[#allocation2 + $0x78] sm:$0xff] %vm220_vm0, %v244_v3  ;;  %v304_v12 = vmax.f32 %v280_v7, %v290_v8  ;;  %v268_v13 = vld [vmem:[#allocation2 + $0x21] ss:$2 sm:$0x7f]  ;;  %v345_v42 = vmax.f32 %v337_v28, 0.0 }
  0x24   : > { %312 = vst.msk [vmem:[%s623_s17] sm:$0x7f] %vm311_vm1, %v303_v5  ;;  %v281_v16 = vmax.f32 %v252_v9, %v268_v13  ;;  %v292_v17 = vld [vmem:[#allocation2 + $0x22] ss:$2 sm:$0x7f] }
  0x25   : > { %313 = vst.msk [vmem:[%s623_s17 + $0x8] sm:$0x7f] %vm311_vm1, %v304_v12  ;;  %v254_v18 = vld [vmem:[#allocation2 + $0x30] ss:$2 sm:$0x7f] }
  0x26   : > { %v305_v19 = vmax.f32 %v281_v16, %v292_v17  ;;  %v270_v20 = vld [vmem:[#allocation2 + $0x31] ss:$2 sm:$0x7f]  ;;  %v294_v21 = vld [vmem:[#allocation2 + $0x32] ss:$2 sm:$0x7f] }
  0x27   : > { %v282_v22 = vmax.f32 %v254_v18, %v270_v20  ;;  %v256_v23 = vld [vmem:[#allocation2 + $0x40] ss:$2 sm:$0x7f]  ;;  %v272_v24 = vld [vmem:[#allocation2 + $0x41] ss:$2 sm:$0x7f] }
  0x28   : > { %314 = vst.msk [vmem:[%s623_s17 + $0x10] sm:$0x7f] %vm311_vm1, %v305_v19  ;;  %v283_v26 = vmax.f32 %v256_v23, %v272_v24  ;;  %v296_v27 = vld [vmem:[#allocation2 + $0x42] ss:$2 sm:$0x7f] }
  0x29   : > { %v306_v29 = vmax.f32 %v282_v22, %v294_v21  ;;  %v258_v30 = vld [vmem:[#allocation2 + $0x50] ss:$2 sm:$0x7f]  ;;  %v274_v31 = vld [vmem:[#allocation2 + $0x51] ss:$2 sm:$0x7f] }
  0x2a   : > { %v307_v32 = vmax.f32 %v283_v26, %v296_v27  ;;  %v284_v33 = vmax.f32 %v258_v30, %v274_v31  ;;  %v298_v34 = vld [vmem:[#allocation2 + $0x52] ss:$2 sm:$0x7f]  ;;  %v260_v35 = vld [vmem:[#allocation2 + $0x60] ss:$2 sm:$0x7f] }
  0x2b   : > { %315 = vst.msk [vmem:[%s623_s17 + $0x18] sm:$0x7f] %vm311_vm1, %v306_v29  ;;  %v276_v36 = vld [vmem:[#allocation2 + $0x61] ss:$2 sm:$0x7f] }
  0x2c   : > { %316 = vst.msk [vmem:[%s623_s17 + $0x20] sm:$0x7f] %vm311_vm1, %v307_v32  ;;  %v308_v39 = vmax.f32 %v284_v33, %v298_v34  ;;  %v285_v40 = vmax.f32 %v260_v35, %v276_v36  ;;  %v300_v41 = vld [vmem:[#allocation2 + $0x62] ss:$2 sm:$0x7f] }
  0x2d   : > { %v262_v43 = vld [vmem:[#allocation2 + $0x70] ss:$2 sm:$0x7f]  ;;  %v278_v44 = vld [vmem:[#allocation2 + $0x71] ss:$2 sm:$0x7f] }
  0x2e   : > { %317 = vst.msk [vmem:[%s623_s17 + $0x28] sm:$0x7f] %vm311_vm1, %v308_v39  ;;  %v309_v45 = vmax.f32 %v285_v40, %v300_v41  ;;  %v286_v46 = vmax.f32 %v262_v43, %v278_v44  ;;  %v302_v47 = vld [vmem:[#allocation2 + $0x72] ss:$2 sm:$0x7f] }
  0x2f   : > { %353 = vst.msk [vmem:[%s623_s17 + $0x7] sm:$0x1] %vm352_vm2, %v344_v37  ;;  %v330_v48 = vld [vmem:[#allocation2 + $0x2f] sm:$0x1]  ;;  %v323_v49 = vld [vmem:[#allocation2 + $0x3e] sm:$0x1] }
  0x30   : > { %318 = vst.msk [vmem:[%s623_s17 + $0x30] sm:$0x7f] %vm311_vm1, %v309_v45  ;;  %v310_v50 = vmax.f32 %v286_v46, %v302_v47  ;;  %v338_v51 = vmax.f32 %v322_v38, %v330_v48  ;;  %v331_v52 = vld [vmem:[#allocation2 + $0x3f] sm:$0x1]  ;;  %v324_v53 = vld [vmem:[#allocation2 + $0x4e] sm:$0x1] }
  0x31   : > { %354 = vst.msk [vmem:[%s623_s17 + $0xf] sm:$0x1] %vm352_vm2, %v345_v42  ;;  %v339_v54 = vmax.f32 %v323_v49, %v331_v52  ;;  %v332_v55 = vld [vmem:[#allocation2 + $0x4f] sm:$0x1]  ;;  %v325_v56 = vld [vmem:[#allocation2 + $0x5e] sm:$0x1] }
  0x32   : > { %319 = vst.msk [vmem:[%s623_s17 + $0x38] sm:$0x7f] %vm311_vm1, %v310_v50  ;;  %v346_v57 = vmax.f32 %v338_v51, 0.0  ;;  %v340_v58 = vmax.f32 %v324_v53, %v332_v55  ;;  %v333_v59 = vld [vmem:[#allocation2 + $0x5f] sm:$0x1] }
  0x33   : > { %v347_v60 = vmax.f32 %v339_v54, 0.0  ;;  %v341_v61 = vmax.f32 %v325_v56, %v333_v59  ;;  %v326_v62 = vld [vmem:[#allocation2 + $0x6e] sm:$0x1]  ;;  %v334_v63 = vld [vmem:[#allocation2 + $0x6f] sm:$0x1] }
  0x34   : > { %355 = vst.msk [vmem:[%s623_s17 + $0x17] sm:$0x1] %vm352_vm2, %v346_v57  ;;  %v348_v0 = vmax.f32 %v340_v58, 0.0  ;;  %v342_v1 = vmax.f32 %v326_v62, %v334_v63  ;;  %v327_v2 = vld [vmem:[#allocation2 + $0x7e] sm:$0x1] }
  0x35   : > { %356 = vst.msk [vmem:[%s623_s17 + $0x1f] sm:$0x1] %vm352_vm2, %v347_v60  ;;  %v349_v3 = vmax.f32 %v341_v61, 0.0  ;;  %v335_v4 = vld [vmem:[#allocation2 + $0x7f] sm:$0x1] }
  0x36   : > { %357 = vst.msk [vmem:[%s623_s17 + $0x27] sm:$0x1] %vm352_vm2, %v348_v0  ;;  %v350_v5 = vmax.f32 %v342_v1, 0.0  ;;  %v343_v6 = vmax.f32 %v327_v2, %v335_v4 }
  0x37   : > { %358 = vst.msk [vmem:[%s623_s17 + $0x2f] sm:$0x1] %vm352_vm2, %v349_v3 }
  0x38   : > { %359 = vst.msk [vmem:[%s623_s17 + $0x37] sm:$0x1] %vm352_vm2, %v350_v5  ;;  %v351_v7 = vmax.f32 %v343_v6, 0.0 }
  0x3a   : > { %360 = vst.msk [vmem:[%s623_s17 + $0x3f] sm:$0x1] %vm352_vm2, %v351_v7 }
  0x3b PF: > { %s11_s8 = sadd.s32 1, %s535_s8   ;;  %s670_s6 = smov %s531_s7 }
  0x3c   : > { %p8_p5 = scmp.ge.s32.totalorder %s11_s8, 4   ;;  %s671_s7 = smov %s673_s9 }
  0x3e   :  { %10 = sbr.rel (!%p8_p5) target bundleno = 2 (0x2), region = 82 }

</bundles_post_ra>
